<compile_context>
chip_gen: v6e
topology: v6e:2x2x1
jax: 0.10.0
libtpu: 0.0.40
codegen_flags: <defaults>
</compile_context>

<pallas_src>
import jax
import jax.numpy as jnp
from jax.experimental import pallas as pl
from jax.experimental.pallas import tpu as pltpu

LANE = 128
SUBLANE = 8
# Safe on every current chip (v7x has 64 MiB VMEM per TensorCore); raise on
# v5e/v6e (128 MiB physical) if larger batch tiles are wanted.
DEFAULT_VMEM_CAP = 48 * 1024 * 1024


def _round_up(n, m):
    return ((n + m - 1) // m) * m


def encoder_kernel(x_ref, w_ref, b_ref, o_ref):
    # Single fused affine map on one (tm, Kp) x (Kp, tn) tile pair:
    # bf16 MXU operands, f32 accumulation, bias add in f32.
    y = jnp.dot(x_ref[...], w_ref[...], preferred_element_type=jnp.float32)
    o_ref[...] = (y + b_ref[...]).astype(o_ref.dtype)


def collapse_and_pad_params(params, *, matmul_dtype=jnp.bfloat16):
    """Fold the activation-free 4-layer stack into one affine map and pad it.

    Runs ONCE at init (weights static at inference): the collapse is done in
    f32 for precision, and the single bf16 cast + lane-dense zero padding
    happen here instead of on every forward call.
    """
    w_eff = params["w1"] @ params["w2"] @ params["w3"] @ params["wo"]
    b_eff = (((params["b1"] @ params["w2"] + params["b2"]) @ params["w3"]
              + params["b3"]) @ params["wo"] + params["bo"])
    G_in, G_out = w_eff.shape
    Kp, Np = _round_up(G_in, LANE), _round_up(G_out, LANE)
    w_pad = jnp.zeros((Kp, Np), matmul_dtype)
    w_pad = w_pad.at[:G_in, :G_out].set(w_eff.astype(matmul_dtype))
    b_pad = jnp.zeros((1, Np), jnp.float32)
    b_pad = b_pad.at[:, :G_out].set(b_eff.astype(jnp.float32))
    return {"w": w_pad, "b": b_pad, "G_in": G_in, "G_out": G_out}


def encoder_forward(x, enc, *, tm=None, tn=None,
                    vmem_cap_bytes=DEFAULT_VMEM_CAP, out_dtype=None):
    """y = out(fc3(fc2(fc1(x)))) via the collapsed single-matmul kernel."""
    B, G_in = x.shape
    assert G_in == enc["G_in"], (G_in, enc["G_in"])
    w, b = enc["w"], enc["b"]
    Kp, Np = w.shape
    out_dtype = x.dtype if out_dtype is None else out_dtype
    w_isz = jnp.dtype(w.dtype).itemsize
    o_isz = jnp.dtype(out_dtype).itemsize

    # Batch tile: multiple of 8 sublanes; large batches get 256-row tiles so
    # the MXU M dimension amortizes weight pushes and per-grid-step overhead,
    # and the "parallel" batch axis gives both v7x TensorCores work.
    if tm is None:
        tm = min(256, _round_up(B, SUBLANE))
    tm = max(SUBLANE, _round_up(tm, SUBLANE))
    Bp = _round_up(max(B, tm), tm)

    def vmem_usage(tn_, weight_bufs):
        return (2 * tm * Kp * w_isz                 # x tile (double buffered)
                + 2 * tm * tn_ * o_isz              # out tile (double buffered)
                + weight_bufs * Kp * tn_ * w_isz    # weight block(s)
                + weight_bufs * SUBLANE * tn_ * 4)  # bias block(s), f32

    # Output-column tiling: keep the whole weight VMEM-resident and single
    # buffered (fetched once) whenever it fits the budget; otherwise tile N so
    # double-buffered weight column DMAs pipeline with the MXU.
    if tn is None:
        if vmem_usage(Np, 1) <= vmem_cap_bytes:
            tn, weight_bufs = Np, 1
        else:
            tn, weight_bufs = LANE, 2
            for cand in range(Np, LANE - 1, -LANE):
                if Np % cand == 0 and vmem_usage(cand, 2) <= vmem_cap_bytes:
                    tn = cand
                    break
            # TODO(synk): if even tn=128 overflows (huge G_in), add a K-tiled
            # reduction grid with an f32 accumulator scratch.
    else:
        tn = max(LANE, _round_up(min(tn, Np), LANE))
        while Np % tn != 0:
            tn -= LANE
        weight_bufs = 1 if tn == Np else 2

    usage = vmem_usage(tn, weight_bufs)
    vmem_limit = int(min(max(int(usage * 1.5) + (2 << 20), 8 << 20),
                         max(vmem_cap_bytes, usage + (2 << 20))))

    # Per-call work: only the activations get padded/cast (weights were padded
    # once at init).  Zero fill keeps padded lanes out of the real outputs.
    xp = jnp.zeros((Bp, Kp), w.dtype).at[:B, :G_in].set(x.astype(w.dtype))

    grid = (Bp // tm, Np // tn)
    w_mode = pl.Buffered(1) if weight_bufs == 1 else None

    in_specs = [
        pl.BlockSpec((tm, Kp), lambda i, j: (i, 0)),                        # x
        pl.BlockSpec((Kp, tn), lambda i, j: (0, j), pipeline_mode=w_mode),  # W_eff
        pl.BlockSpec((1, tn), lambda i, j: (0, j), pipeline_mode=w_mode),   # b_eff
    ]
    out_specs = pl.BlockSpec((tm, tn), lambda i, j: (i, j))

    flops = 2 * Bp * Kp * Np
    bytes_accessed = (xp.size * w_isz + w.size * w_isz + b.size * 4
                      + Bp * Np * o_isz)

    y_pad = pl.pallas_call(
        encoder_kernel,
        out_shape=jax.ShapeDtypeStruct((Bp, Np), out_dtype),
        grid=grid,
        in_specs=in_specs,
        out_specs=out_specs,
        compiler_params=pltpu.CompilerParams(
            dimension_semantics=("parallel", "parallel"),
            vmem_limit_bytes=vmem_limit,
        ),
        cost_estimate=pl.CostEstimate(
            flops=flops, transcendentals=0, bytes_accessed=bytes_accessed),
    )(xp, w, b)

    return y_pad[:B, :enc["G_out"]]


def init_params(key, G_in, G_out, w1, w2, w3, dtype=jnp.float32):
    """nn.Linear-style init, U(-1/sqrt(fan_in), 1/sqrt(fan_in)); weights stored
    (in_features, out_features) = transpose of nn.Linear.weight."""
    dims = [(G_in, w1), (w1, w2), (w2, w3), (w3, G_out)]
    names = ["1", "2", "3", "o"]
    params = {}
    keys = jax.random.split(key, 2 * len(dims))
    for i, ((fin, fout), name) in enumerate(zip(dims, names)):
        bound = 1.0 / (fin ** 0.5)
        params[f"w{name}"] = jax.random.uniform(
            keys[2 * i], (fin, fout), dtype, minval=-bound, maxval=bound)
        params[f"b{name}"] = jax.random.uniform(
            keys[2 * i + 1], (1, fout), dtype, minval=-bound, maxval=bound)
    return params


def reference_f32(x, params):
    h = x
    for n in ["1", "2", "3", "o"]:
        h = h @ params[f"w{n}"] + params[f"b{n}"]
    return h


if __name__ == "__main__":
    key = jax.random.PRNGKey(0)
    kx1, kp1, kx2, kp2 = jax.random.split(key, 4)

    # ---- Case 1: toy module shapes; full weight VMEM-resident + Buffered(1);
    # tm=8 forces a 2-step "parallel" batch grid. ----
    B, G_in, G_out, w1, w2, w3 = 16, 32, 16, 64, 64, 32
    x = jax.random.normal(kx1, (B, G_in), dtype=jnp.float32)
    params = init_params(kp1, G_in, G_out, w1, w2, w3)
    enc = collapse_and_pad_params(params)

    out = jax.block_until_ready(encoder_forward(x, enc, tm=8))
    assert out.shape == (B, G_out)

    # Tight check against a reference with the kernel's exact numerics
    # (bf16 collapsed weight, f32 accumulation).
    ref_match = (jnp.dot(x.astype(jnp.bfloat16), enc["w"][:G_in, :G_out],
                         preferred_element_type=jnp.float32)
                 + enc["b"][:, :G_out])
    assert jnp.allclose(out, ref_match, atol=1e-4, rtol=1e-4), \
        float(jnp.max(jnp.abs(out - ref_match)))

    # Looser check against the pure-f32 PyTorch-semantics forward.
    ref = reference_f32(x, params)
    assert jnp.allclose(out, ref, atol=2e-2, rtol=2e-2), \
        float(jnp.max(jnp.abs(out - ref)))

    # Default tiling (single grid step) must agree with the tiled run.
    out_default = jax.block_until_ready(encoder_forward(x, enc))
    assert jnp.allclose(out, out_default, atol=1e-6, rtol=1e-6)

    # ---- Case 2: unaligned feature dims + forced output-column tiling
    # (Np=256, tn=128 -> 2-D grid, double-buffered weight columns). ----
    B2, G_in2, G_out2 = 20, 70, 200
    x2 = jax.random.normal(kx2, (B2, G_in2), dtype=jnp.float32)
    params2 = init_params(kp2, G_in2, G_out2, 48, 96, 72)
    enc2 = collapse_and_pad_params(params2)

    out2 = jax.block_until_ready(encoder_forward(x2, enc2, tm=8, tn=128))
    assert out2.shape == (B2, G_out2)

    ref2_match = (jnp.dot(x2.astype(jnp.bfloat16), enc2["w"][:G_in2, :G_out2],
                          preferred_element_type=jnp.float32)
                  + enc2["b"][:, :G_out2])
    assert jnp.allclose(out2, ref2_match, atol=1e-4, rtol=1e-4), \
        float(jnp.max(jnp.abs(out2 - ref2_match)))
    ref2 = reference_f32(x2, params2)
    assert jnp.allclose(out2, ref2, atol=2e-2, rtol=2e-2), \
        float(jnp.max(jnp.abs(out2 - ref2)))

    print("KERNEL_OK")
</pallas_src>

<mosaic_0001>
module attributes {stable_mosaic.version = 11 : i64} {
  func.func @encoder_kernel(%arg0: i32, %arg1: i32, %arg2: memref<8x128xbf16, #tpu.memory_space<vmem>>, %arg3: memref<128x128xbf16, #tpu.memory_space<vmem>>, %arg4: memref<1x128xf32, #tpu.memory_space<vmem>>, %arg5: memref<8x128xf32, #tpu.memory_space<vmem>>) attributes {dimension_semantics = [#tpu.dimension_semantics<parallel>, #tpu.dimension_semantics<parallel>], iteration_bounds = array<i64: 2, 1>, scalar_prefetch = 0 : i64, scratch_operands = 0 : i64, tpu.core_type = #tpu.core_type<tc>, window_params = [{transform_indices = @transform_0, window_bounds = array<i64: 8, 128>}, {pipeline_mode = #tpu.pipeline_mode<synchronous>, transform_indices = @transform_1, window_bounds = array<i64: 128, 128>}, {pipeline_mode = #tpu.pipeline_mode<synchronous>, transform_indices = @transform_2, window_bounds = array<i64: 1, 128>}, {transform_indices = @transform_3, window_bounds = array<i64: 8, 128>}]} {
    %c0 = arith.constant 0 : index
    %c0_0 = arith.constant 0 : index
    %0 = vector.load %arg2[%c0, %c0_0] : memref<8x128xbf16, #tpu.memory_space<vmem>>, vector<8x128xbf16>
    %c0_1 = arith.constant 0 : index
    %c0_2 = arith.constant 0 : index
    %1 = vector.load %arg3[%c0_1, %c0_2] : memref<128x128xbf16, #tpu.memory_space<vmem>>, vector<128x128xbf16>
    %cst = arith.constant dense<0.000000e+00> : vector<8x128xf32>
    %2 = tpu.matmul %0, %1, %cst {dimension_numbers = #tpu.dot_dimension_numbers<[1], [0], [0], [1], [0, 0, 1, 1], [], []>} : vector<8x128xbf16>, vector<128x128xbf16>, vector<8x128xf32> -> vector<8x128xf32>
    %c0_3 = arith.constant 0 : index
    %c0_4 = arith.constant 0 : index
    %3 = vector.load %arg4[%c0_3, %c0_4] : memref<1x128xf32, #tpu.memory_space<vmem>>, vector<1x128xf32>
    %4 = vector.broadcast %3 : vector<1x128xf32> to vector<8x128xf32>
    %5 = arith.addf %2, %4 : vector<8x128xf32>
    %c0_5 = arith.constant 0 : index
    %c0_6 = arith.constant 0 : index
    %6 = vector.load %arg5[%c0_5, %c0_6] : memref<8x128xf32, #tpu.memory_space<vmem>>, vector<8x128xf32>
    tpu.vector_store %arg5[%c0_5, %c0_6], %5 {strides = array<i32>} : memref<8x128xf32, #tpu.memory_space<vmem>>, vector<8x128xf32>,
    return
  }
  func.func @transform_0(%arg0: i32, %arg1: i32) -> (i32, i32) {
    %c0_i32 = arith.constant 0 : i32
    %c0_i32_0 = arith.constant 0 : i32
    return %arg0, %c0_i32 : i32, i32
  }
  func.func @transform_1(%arg0: i32, %arg1: i32) -> (i32, i32) {
    %c0_i32 = arith.constant 0 : i32
    %c0_i32_0 = arith.constant 0 : i32
    return %c0_i32, %arg1 : i32, i32
  }
  func.func @transform_2(%arg0: i32, %arg1: i32) -> (i32, i32) {
    %c0_i32 = arith.constant 0 : i32
    %c0_i32_0 = arith.constant 0 : i32
    return %c0_i32, %arg1 : i32, i32
  }
  func.func @transform_3(%arg0: i32, %arg1: i32) -> (i32, i32) {
    %c0_i32 = arith.constant 0 : i32
    return %arg0, %arg1 : i32, i32
  }
}

</mosaic_0001>

<bundles_post_ra>
// kernel: tpu_custom_call.1
= control target key start
LH: loop header
LB: loop body
LE: loop exit
PB: predicated region body
PF: predicated region fallthrough
CT: control target
= control target key end

     0   :  { %8 = vsyncpa [#allocation3], 0  ;;  %s960_s0 = inlined_call_operand.hbm [shape: bf16[16,128], index: 0, kind: input, shape index: {}]   ;;  %s961_s1 = inlined_call_operand.hbm [shape: bf16[128,128], index: 1, kind: input, shape index: {}]   ;;  %s962_s2 = inlined_call_operand.vmem [shape: f32[1,128], index: 2, kind: input, shape index: {}]   ;;  %s963_s3 = inlined_call_operand.hbm [shape: f32[16,128], index: 3, kind: output, shape index: {}]  }
   0x1   :  { %10 = vsyncpa [#allocation3 + $0x1], 0 }
   0x2   :  { %11 = vsyncpa [#allocation6], 0 }
   0x3   :  { %12 = vsyncpa [#allocation4], 0 }
   0x4   :  { %14 = vsyncpa [#allocation4 + $0x1], 0  ;;  %s774_s12 = smov 0   ;;  %s776_s13 = smov 0  }
   0x5   :  { %s778_s14 = smov 0   ;;  %s780_s15 = smov 0  }
   0x6   :  { %s782_s16 = smov 0   ;;  %s784_s17 = smov 0  }
   0x7 LB: > { %s468_s18 = sadd.s32 4294967295, %s745_s17   ;;  %s469_s19 = sadd.s32 4294967294, %s745_s17   ;;  %s745_s17 = sphi %s784_s17, %s20_s17   ;;  %s741_s16 = sphi %s782_s16, %s981_s16   ;;  %s737_s15 = sphi %s780_s15, %s980_s15   ;;  %s733_s14 = sphi %s778_s14, %s979_s14   ;;  %s729_s13 = sphi %s776_s13, %s978_s13   ;;  %s725_s12 = sphi %s774_s12, %s977_s12  }
   0x8   : > { %p52_p0 = scmp.ne.s32.totalorder %s729_s13, %s725_s12  ;;  %p808_p1 = scmp.eq.s32.totalorder %s468_s18, 0 }
   0x9   : > { %p812_p2 = scmp.eq.s32.totalorder %s468_s18, 1  ;;  %p136_p3 = scmp.eq.s32.totalorder %s469_s19, 1 }
   0xa   : > { %p818_p4 = por %p808_p1, %p52_p0  ;;  %p470_p5 = scmp.ge.s32.totalorder %s745_s17, 1 }
   0xb   : > { %p823_p6 = por %p136_p3, %p52_p0  ;;  %p143_p7 = scmp.lt.s32.totalorder %s745_s17, 3 }
   0xc   : > { %s967_s22 = scalar_select %p818_p4, 1, 0 }
   0xd   : > { %s968_s23 = scalar_select %p823_p6, 1, 0 }
   0xe   : > { %p828_p8 = pnand %p470_p5, %p143_p7  ;;  %s747_s25 = smov [#allocation5]  }
   0xf   : > { %s157_s26 = sshll.u32 %s747_s25, 4  ;;  %s32_s28 = sadd.s32 1, %s741_s16  ;;  %s158_s26 = int_to_ptr.vmem [resolvable:$true] %s157_s26 }
  0x10   : > { %p530_p9 = pneg %p828_p8  ;;  %s618_s29 = scalar_lea.vmem %s158_s26, 1024 }
  0x11   : > { %p619_p13 = scmp.ne.s32.totalorder %s158_s26, %s618_s29  ;;  %p626_p5 = scmp.lt.s32.totalorder %s158_s26, %s158_s26 }
  0x12   : > { %p837_p11 = pnand %p530_p9, %p808_p1  ;;  %p627_p7 = scmp.lt.s32.totalorder %s618_s29, %s618_s29 }
  0x14   : > { %p609_p12 = pneg %p837_p11  ;;  %p628_p6 = por %p627_p7, %p626_p5 }
  0x16   : > { %p621_p0 = pnand %p619_p13, %p609_p12 }
  0x18   : > { %p622_p3 = pneg %p621_p0 }
  0x1a   : > { %p629_p4 = pnand %p628_p6, %p622_p3 }
  0x1c   : > { %632 = shalt.err (!%p629_p4)
}
  0x1d   : > { %s748_s30 = smov 64   ;;  %s749_s4 = smov 4  }
  0x1e   : > { %533 = dma.hbm_to_vmem [thread:$0]  (!%p837_p11), %s961_s1, 1024, %s158_s26, [#allocation6], %s748_s30, %s748_s30, %s749_s4  }
  0x1f   : > { %p34_p6 = scmp.ge.s32.totalorder %s32_s28, 2  ;;  %s39_s7 = sadd.s32 1, %s733_s14 }
  0x20   : > { %p46_p4 = scmp.ne.s32.totalorder %s733_s14, %s729_s13  ;;  %p47_p9 = scmp.eq.s32.totalorder %s745_s17, 0 }
  0x21   : > { %s983_s28 = smov (%p34_p6, %s32_s28), 0  ;;  %p543_p0 = scmp.lt.s32.totalorder %s745_s17, 2 }
  0x22   : > { %p855_p12 = por %p47_p9, %p46_p4  ;;  %p861_p13 = por %p812_p2, %p46_p4 }
  0x23   : > { %s36_s10 = ssub.s32 %s741_s16, %s983_s28  ;;  %s177_s11 = sand.u32 1, %s733_s14  }
  0x24   : > { %p37_p11 = scmp.eq.s32.totalorder %s36_s10, 0  ;;  %s474_s18 = sshll.u32 %s177_s11, 2 }
  0x25   : > { %s475_s25 = sshll.u32 %s741_s16, 6  ;;  %s181_s30 = scalar_lea.vmem [#allocation2], %s474_s18 }
  0x26   : > { %s870_s19 = scalar_select %p37_p11, %s733_s14, %s39_s7  }
  0x27   : > { %s186_s29 = scalar_lea.hbm %s960_s0, %s475_s25  ;;  %s188_s4 = sshll.u32 %s181_s30, 4  ;;  %s189_s4 = int_to_ptr.vmem [resolvable:$true] %s188_s4 }
  0x28   : > { %p878_p2 = pnand %p543_p0, %p855_p12  ;;  %s178_s5 = scalar_lea.sflag [#allocation3], %s177_s11 }
  0x29   : > { %s646_s6 = scalar_lea.vmem %s189_s4, 64  ;;  %s750_s7 = smov [#allocation2]  }
  0x2a   : > { %p635_p3 = pneg %p878_p2  ;;  %p647_p5 = scmp.ne.s32.totalorder %s189_s4, %s646_s6 }
  0x2b   : > { %s651_s10 = sshll.u32 %s750_s7, 4  ;;  %s652_s10 = int_to_ptr.vmem [resolvable:$false] %s651_s10 }
  0x2c   : > { %p649_p7 = pnand %p647_p5, %p635_p3  ;;  %s653_s25 = scalar_lea.vmem %s652_s10, 128 }
  0x2d   : > { %p654_p4 = scmp.lt.s32.totalorder %s189_s4, %s652_s10  ;;  %p655_p9 = scmp.lt.s32.totalorder %s653_s25, %s646_s6 }
  0x2e   : > { %p650_p6 = pneg %p649_p7 }
  0x2f   : > { %p656_p11 = por %p655_p9, %p654_p4 }
  0x31   : > { %p657_p10 = pnand %p656_p11, %p650_p6 }
  0x33   : > { %660 = shalt.err (!%p657_p10)
}
  0x34   : > { %537 = dma.hbm_to_vmem [thread:$0]  (!%p878_p2), %s186_s29, 64, %s189_s4, %s178_s5  }
  0x35   : > { %197 = sbr.rel (%p828_p8) target bundleno = 303 (0x12f), region = 32  ;;  %s889_s8 = sand.u32 (!%p828_p8), 1, %s729_s13  }
  0x36   : > { %s477_s11 = sshll.u32 (!%p828_p8), %s889_s8, 2  ;;  %s200_s18 = scalar_lea.sflag (!%p828_p8), [#allocation3], %s889_s8 }
  0x37   : > { %s893_s26 = scalar_lea.vmem (!%p828_p8), [#allocation2], %s477_s11  ;;  %p974_p12 = scmp.ne.s32.totalorder (!%p828_p8), %s967_s22, 0 }
  0x3a   : > { %712 = dma.done.wait (%p974_p12), %s200_s18, 64  }
  0x3b   : > { %714 = vsyncadd (%p974_p12), %s200_s18, 4294967232 }
  0x3c   : > { %716 = dma.done.wait (%p808_p1), [#allocation6], 1024  }
  0x3d   : > { %718 = vsyncadd (%p808_p1), [#allocation6], 4294966272  ;;  %v751_v0 = vmov 0.0   ;;  %vm752_vm0 = vmmov 0   ;;  %v599_v1 = vld [vmem:[#allocation5 + $0x38] sm:$0xff]   ;;  %v600_v2 = vld [vmem:[#allocation5 + $0x30] sm:$0xff]  }
  0x3e   : > { %502 = vmatprep.subr.bf16.mxu0 %v751_v0  ;;  %518 = vmatprep.mubr.msk.bf16.mxu0 %vm752_vm0, %v751_v0  ;;  %v601_v3 = vld [vmem:[#allocation5 + $0x28] sm:$0xff]   ;;  %v602_v4 = vld [vmem:[#allocation5 + $0x20] sm:$0xff]   ;;  %v603_v5 = vld [vmem:[#allocation5 + $0x18] sm:$0xff]   ;;  %s479_s20 = sshll.u32 %s889_s8, 3  ;;  %s490_s27 = sshll.u32 %s737_s15, 7 }
  0x3f   : > { %503 = vmatpush3.bf16.msra.mxu0 %v599_v1  ;;  %v604_v6 = vld [vmem:[#allocation5 + $0x10] sm:$0xff]   ;;  %v605_v7 = vld [vmem:[#allocation5 + $0x8] sm:$0xff]   ;;  %v606_v8 = vld [vmem:[#allocation5] sm:$0xff]   ;;  %s232_s29 = scalar_lea.vmem [#allocation7], %s479_s20  ;;  %s912_s5 = scalar_lea.hbm %s963_s3, %s490_s27 }
  0x40   : > { %504 = vmatprep.subr.bf16.mxu0 %v751_v0  ;;  %v237_v9 = vld [vmem:[%s893_s26] sm:$0xf]  ;;  %s365_s30 = sshll.u32 %s232_s29, 4  ;;  %s351_s6 = scalar_lea.sflag [#allocation4], %s889_s8  ;;  %s914_s30 = int_to_ptr.vmem [resolvable:$true] %s365_s30 }
  0x41   : > { %v480_v10 = vld [vmem:[%s962_s2] ss:$0 sm:$0xff]  ;;  %s661_s7 = scalar_lea.vmem %s914_s30, 128  ;;  %s753_s15 = smov [#allocation7]  }
  0x42   : > { %p662_p1 = scmp.ne.s32.totalorder %s914_s30, %s661_s7  ;;  %s665_s10 = sshll.u32 %s753_s15, 4  ;;  %s666_s10 = int_to_ptr.vmem [resolvable:$false] %s665_s10 }
  0x43   : > { %505 = vmatpush3.bf16.msra.mxu0 %v600_v2  ;;  %s667_s25 = scalar_lea.vmem %s666_s10, 256  ;;  %p668_p0 = scmp.lt.s32.totalorder %s914_s30, %s666_s10 }
  0x44   : > { %506 = vmatprep.subr.bf16.mxu0 %v751_v0  ;;  %p663_p8 = pnand %p662_p1, %p861_p13  ;;  %p669_p2 = scmp.lt.s32.totalorder %s667_s25, %s661_s7 }
  0x46   : > { %p664_p10 = pneg %p663_p8  ;;  %p670_p3 = por %p669_p2, %p668_p0 }
  0x47   : > { %507 = vmatpush3.bf16.msra.mxu0 %v601_v3 }
  0x48   : > { %508 = vmatprep.subr.bf16.mxu0 %v751_v0  ;;  %p671_p5 = pnand %p670_p3, %p664_p10 }
  0x4b   : > { %509 = vmatpush3.bf16.msra.mxu0 %v602_v4 }
  0x4c   : > { %510 = vmatprep.subr.bf16.mxu0 %v751_v0 }
  0x4f   : > { %511 = vmatpush3.bf16.msra.mxu0 %v603_v5 }
  0x50   : > { %512 = vmatprep.subr.bf16.mxu0 %v751_v0 }
  0x53   : > { %513 = vmatpush3.bf16.msra.mxu0 %v604_v6 }
  0x54   : > { %514 = vmatprep.subr.bf16.mxu0 %v751_v0 }
  0x57   : > { %515 = vmatpush3.bf16.msra.mxu0 %v605_v7 }
  0x58   : > { %516 = vmatprep.subr.bf16.mxu0 %v751_v0 }
  0x5b   : > { %517 = vmatpush3.bf16.msra.mxu0 %v606_v8 }
  0x5e   : > { %519 = vmatmul.mubr.bf16.vlgmr.msra.gmra.mxu0 %v237_v9 }
 0x11e   : > { %v343_v11 = vpop.f32.mrf.mxu0 }
 0x11f   : > { %v344_v12 = vadd.f32 %v480_v10, %v343_v11 }
 0x120   : > { %v520_v13 = vpop.f32.mrf.mxu0 }
 0x121   : > { %349 = vst [vmem:[%s232_s29] sm:$0xff] %v344_v12 }
 0x122   : > { %v346_v14 = vpop.f32.mrf.mxu0 }
 0x123   : > { %674 = shalt.err (!%p671_p5)
}
 0x124   : > { %s675_s11 = scalar_lea.hbm %s912_s5, 128  ;;  %s679_s26 = scalar_lea.hbm %s963_s3, 256 }
 0x125   : > { %p676_p7 = scmp.ne.s32.totalorder %s912_s5, %s675_s11  ;;  %p680_p9 = scmp.lt.s32.totalorder %s912_s5, %s963_s3 }
 0x126   : > { %p681_p11 = scmp.lt.s32.totalorder %s679_s26, %s675_s11 }
 0x127   : > { %p677_p6 = pnand %p676_p7, %p861_p13 }
 0x128   : > { %p682_p12 = por %p681_p11, %p680_p9 }
 0x129   : > { %p678_p4 = pneg %p677_p6 }
 0x12b   : > { %p683_p1 = pnand %p682_p12, %p678_p4 }
 0x12d   : > { %686 = shalt.err (!%p683_p1)
}
 0x12e   : > { %528 = dma.vmem_to_hbm [thread:$0]  (%p861_p13), %s914_s30, 128, %s912_s5, %s351_s6   ;;  %v521_v15 = vpop.f32.mrf.mxu0 }
 0x12f PF: > { %s377_s24 = sand.u32 1, %s725_s12   ;;  %p975_p8 = scmp.ne.s32.totalorder %s968_s23, 0 }
 0x130   : > { %p976_p10 = scmp.ge.s32.totalorder %s745_s17, 2  ;;  %s378_s27 = scalar_lea.sflag [#allocation4], %s377_s24 }
 0x132   : > { %p539_p0 = pnand %p976_p10, %p975_p8 }
 0x134   : > { %p540_p2 = pneg %p539_p0 }
 0x136   : > { %720 = dma.done.wait (%p540_p2), %s378_s27, 128  }
 0x137   : > { %722 = vsyncadd (%p540_p2), %s378_s27, 4294967168  ;;  %s20_s17 = sadd.s32 1, %s745_s17   ;;  %s977_s12 = smov %s729_s13 }
 0x138   : > { %p17_p3 = scmp.ge.s32.totalorder %s20_s17, 4   ;;  %s978_s13 = smov %s733_s14 }
 0x139   : > { %s979_s14 = smov %s870_s19  ;;  %s980_s15 = smov %s741_s16 }
 0x13a   : > { %s981_s16 = smov %s983_s28  ;;  %19 = sbr.rel (!%p17_p3) target bundleno = 7 (0x7), region = 85 }
 0x13f   :  { %383 = vsyncpa [#allocation3], 1 }
 0x140   :  { %385 = vsyncpa [#allocation3 + $0x1], 1 }
 0x141   :  { %386 = vsyncpa [#allocation6], 1 }
 0x142   :  { %387 = vsyncpa [#allocation4], 1 }
 0x143   :  { %389 = vsyncpa [#allocation4 + $0x1], 1 }

</bundles_post_ra>
